<compile_context>
chip_gen: v7x
topology: tpu7x:2x2x1
jax: 0.10.0
libtpu: 0.0.40
codegen_flags: <defaults>
</compile_context>

<pallas_src>
import math
import functools

import jax
import jax.numpy as jnp
from jax import lax
from jax.experimental import pallas as pl
from jax.experimental.pallas import tpu as pltpu

LOG_2PI = math.log(2.0 * math.pi)


def _round_up(a, b):
    return (a + b - 1) // b * b


def _drawing_loss_kernel(x_ref, mix_ref, mean_ref, scale_ref, corr_ref,
                         vlogp_ref, v_ref, out_ref, acc_ref,
                         *, reg_covar, training, n_total, tile_n, steps):
    core = pl.program_id(0)     # "parallel" axis (megacore split)
    step = pl.program_id(1)     # "arbitrary" axis over N tiles

    @pl.when(step == 0)
    def _init():
        acc_ref[...] = jnp.zeros_like(acc_ref)

    f32 = jnp.float32
    x = x_ref[...].astype(f32)                  # (2, tile_n)
    x0 = x[0:1, :]
    x1 = x[1:2, :]
    mix = mix_ref[...].astype(f32)              # (K, tile_n) mixture log-weights
    mx = mean_ref[0].astype(f32)                # (K, tile_n)
    my = mean_ref[1].astype(f32)
    sx = scale_ref[0].astype(f32)               # (K, tile_n) scales (>0)
    sy = scale_ref[1].astype(f32)
    corr = corr_ref[...].astype(f32)            # (K, tile_n)

    # Tikhonov regularization on the covariance diagonal, folded directly into
    # the covariance-form log-density (equivalent to tikhonov_reg2d followed
    # by mvn_log_prob, but with no sqrt / per-element divides by sx, sy).
    var_x = sx * sx + reg_covar
    var_y = sy * sy + reg_covar
    cov_xy = corr * sx * sy

    dx = x0 - mx                                # broadcast (1,n) vs (K,n)
    dy = x1 - my
    det = var_x * var_y - cov_xy * cov_xy
    quad = (dx * dx * var_y - 2.0 * cov_xy * (dx * dy) + dy * dy * var_x) / det
    comp_logp = mix - 0.5 * (quad + jnp.log(det)) - LOG_2PI     # (K, tile_n)

    # logsumexp over the mixture components (sublane axis).
    m = jnp.max(comp_logp, axis=0, keepdims=True)               # (1, tile_n)
    gmm_logp = m + jnp.log(jnp.sum(jnp.exp(comp_logp - m), axis=0, keepdims=True))
    losses_x = -gmm_logp                                        # (1, tile_n)

    # Pen-state NLL: -v_logp[v] via one-hot select over V sublane rows.
    v = v_ref[...]                                              # (1, tile_n) int32
    vlogp = vlogp_ref[...].astype(f32)                          # (V, tile_n)
    cls_ids = lax.broadcasted_iota(jnp.int32, vlogp.shape, 0)
    losses_v = -jnp.sum(jnp.where(cls_ids == v, vlogp, 0.0),
                        axis=0, keepdims=True)                  # (1, tile_n)

    # Column validity (padding past n_total must not contribute to any sum).
    col = (core * steps + step) * tile_n + lax.broadcasted_iota(
        jnp.int32, (1, tile_n), 1)
    valid = col < n_total
    mask = jnp.logical_and(valid, v != 2)

    # Per-lane partial accumulation (no per-step cross-lane reduce / tiny store).
    acc_ref[0:1, :] += jnp.where(mask, losses_x, 0.0)
    if training:
        acc_ref[1:2, :] += jnp.where(valid, losses_v, 0.0)
    else:
        acc_ref[1:2, :] += jnp.where(mask, losses_v, 0.0)
    acc_ref[2:3, :] += mask.astype(f32)

    @pl.when(step == steps - 1)
    def _finalize():
        sums = jnp.sum(acc_ref[...], axis=1, keepdims=True)     # (3, 1)
        out_ref[...] = jnp.broadcast_to(sums, (3, 128))[None]   # (1, 3, 128)


def drawing_loss(x, v, params, reg_covar=1e-6, training=True,
                 *, tile_n=2048, num_cores=2):
    """Pallas implementation of DrawingLoss.forward.

    x: (T, B, 2) float, v: (T, B) int in {0, 1, 2}
    params = (mix_logp (T,B,K), means (T,B,K,2), scales (T,B,K,2),
              corrs (T,B,K), v_logp (T,B,V))
    """
    mix_logp, means, scales, corrs, v_logp = params
    T, B, K = mix_logp.shape
    V = v_logp.shape[-1]
    N = T * B

    # Lane-dense layout: N on lanes, K/V/2 on sublanes.
    # TODO(synk): if the producer emitted (K, T*B)-major tensors these
    # transposes would be free views; here they are single layout passes.
    x_t = x.reshape(N, 2).T                                   # (2, N)
    mix_t = mix_logp.reshape(N, K).T                          # (K, N)
    means_t = means.reshape(N, K, 2).transpose(2, 1, 0)       # (2, K, N)
    scales_t = scales.reshape(N, K, 2).transpose(2, 1, 0)     # (2, K, N)
    corrs_t = corrs.reshape(N, K).T                           # (K, N)
    vlogp_t = v_logp.reshape(N, V).T                          # (V, N)
    v_t = v.reshape(1, N).astype(jnp.int32)                   # (1, N)

    # Tile sizing: multiples of 128 lanes, modest VMEM footprint everywhere
    # (v5e/v6e 128 MiB, v7x 64 MiB) with double buffering.
    tile_n = max(128, min(int(tile_n), _round_up(N, 128)))
    tile_n = _round_up(tile_n, 128)
    chunk = tile_n * num_cores
    n_pad = _round_up(N, chunk)
    steps = n_pad // chunk                                    # tiles per core
    pad = n_pad - N
    if pad:
        x_t = jnp.pad(x_t, ((0, 0), (0, pad)))
        mix_t = jnp.pad(mix_t, ((0, 0), (0, pad)))
        means_t = jnp.pad(means_t, ((0, 0), (0, 0), (0, pad)))
        scales_t = jnp.pad(scales_t, ((0, 0), (0, 0), (0, pad)),
                           constant_values=1.0)
        corrs_t = jnp.pad(corrs_t, ((0, 0), (0, pad)))
        vlogp_t = jnp.pad(vlogp_t, ((0, 0), (0, pad)))
        v_t = jnp.pad(v_t, ((0, 0), (0, pad)), constant_values=2)

    kernel = functools.partial(
        _drawing_loss_kernel,
        reg_covar=float(reg_covar),
        training=bool(training),
        n_total=N,
        tile_n=tile_n,
        steps=steps,
    )

    def col(c, i):
        return c * steps + i

    partials = pl.pallas_call(
        kernel,
        out_shape=jax.ShapeDtypeStruct((num_cores, 3, 128), jnp.float32),
        grid=(num_cores, steps),
        in_specs=[
            pl.BlockSpec((2, tile_n), lambda c, i: (0, col(c, i))),         # x
            pl.BlockSpec((K, tile_n), lambda c, i: (0, col(c, i))),         # mix
            pl.BlockSpec((2, K, tile_n), lambda c, i: (0, 0, col(c, i))),   # means
            pl.BlockSpec((2, K, tile_n), lambda c, i: (0, 0, col(c, i))),   # scales
            pl.BlockSpec((K, tile_n), lambda c, i: (0, col(c, i))),         # corrs
            pl.BlockSpec((V, tile_n), lambda c, i: (0, col(c, i))),         # v_logp
            pl.BlockSpec((1, tile_n), lambda c, i: (0, col(c, i))),         # v
        ],
        out_specs=pl.BlockSpec((1, 3, 128), lambda c, i: (c, 0, 0)),
        scratch_shapes=[pltpu.VMEM((3, tile_n), jnp.float32)],
        compiler_params=pltpu.CompilerParams(
            dimension_semantics=("parallel", "arbitrary")),
    )(x_t, mix_t, means_t, scales_t, corrs_t, vlogp_t, v_t)

    sum_lx = jnp.sum(partials[:, 0, 0])
    sum_lv = jnp.sum(partials[:, 1, 0])
    cnt = jnp.sum(partials[:, 2, 0])
    loss_x = sum_lx / cnt
    loss_v = sum_lv / float(N) if training else sum_lv / cnt
    return loss_x + loss_v


def drawing_loss_ref(x, v, params, reg_covar=1e-6, training=True):
    """Pure-JAX reference mirroring the PyTorch module."""
    mix_logp, means, scales, corrs, v_logp = params
    if reg_covar > 0:
        var = scales ** 2 + reg_covar
        cov = corrs * scales[..., 0] * scales[..., 1]
        scales = jnp.sqrt(var)
        corrs = cov / jnp.sqrt(var[..., 0] * var[..., 1])
    diff = (x[..., None, :] - means) / scales
    z1 = jnp.sum(diff ** 2, -1)
    z2 = 2.0 * corrs * jnp.prod(diff, -1)
    logp1 = -0.5 * (z1 - z2) / (1.0 - corrs ** 2)
    logp2 = (-0.5 * jnp.log(1.0 - corrs ** 2)
             - jnp.sum(jnp.log(scales), -1) - LOG_2PI)
    mvn_logp = logp1 + logp2
    gmm_logp = jax.scipy.special.logsumexp(mix_logp + mvn_logp, axis=-1)
    losses_x = -gmm_logp
    losses_v = -jnp.take_along_axis(v_logp, v[..., None], axis=-1)[..., 0]
    mask = (v != 2)
    loss_x = jnp.sum(jnp.where(mask, losses_x, 0.0)) / jnp.sum(mask)
    if training:
        loss_v = jnp.mean(losses_v)
    else:
        loss_v = jnp.sum(jnp.where(mask, losses_v, 0.0)) / jnp.sum(mask)
    return loss_x + loss_v


if __name__ == "__main__":
    T, B, K, V = 8, 2, 4, 3
    key = jax.random.PRNGKey(0)
    kx, kv, kmix, kmu, ksc, kcr, kvl = jax.random.split(key, 7)

    x = jax.random.normal(kx, (T, B, 2), dtype=jnp.float32)
    v = jax.random.randint(kv, (T, B), 0, 3, dtype=jnp.int32)
    mix_logp = jax.nn.log_softmax(jax.random.normal(kmix, (T, B, K)), axis=-1)
    means = jax.random.normal(kmu, (T, B, K, 2), dtype=jnp.float32)
    scales = jnp.exp(0.5 * jax.random.normal(ksc, (T, B, K, 2)))
    corrs = 0.9 * jnp.tanh(jax.random.normal(kcr, (T, B, K)))
    v_logp = jax.nn.log_softmax(jax.random.normal(kvl, (T, B, V)), axis=-1)

    params = (mix_logp, means, scales, corrs, v_logp)

    ok = True
    for training in (True, False):
        loss = drawing_loss(x, v, params, reg_covar=1e-6, training=training)
        loss = jax.block_until_ready(loss)
        ref = drawing_loss_ref(x, v, params, reg_covar=1e-6, training=training)
        assert jnp.isfinite(loss), "loss is not finite"
        assert jnp.allclose(loss, ref, rtol=1e-4, atol=1e-4), (training, loss, ref)

    if ok:
        print("KERNEL_OK")
</pallas_src>

<mosaic_0001>
module attributes {stable_mosaic.version = 11 : i64} {
  func.func @_drawing_loss_kernel(%arg0: i32, %arg1: i32, %arg2: memref<2x128xf32, #tpu.memory_space<vmem>>, %arg3: memref<4x128xf32, #tpu.memory_space<vmem>>, %arg4: memref<2x4x128xf32, #tpu.memory_space<vmem>>, %arg5: memref<2x4x128xf32, #tpu.memory_space<vmem>>, %arg6: memref<4x128xf32, #tpu.memory_space<vmem>>, %arg7: memref<3x128xf32, #tpu.memory_space<vmem>>, %arg8: memref<1x128xi32, #tpu.memory_space<vmem>>, %arg9: memref<1x3x128xf32, #tpu.memory_space<vmem>>, %arg10: memref<3x128xf32, #tpu.memory_space<vmem>>) attributes {dimension_semantics = [#tpu.dimension_semantics<parallel>, #tpu.dimension_semantics<arbitrary>], iteration_bounds = array<i64: 2, 1>, scalar_prefetch = 0 : i64, scratch_operands = 1 : i64, tpu.core_type = #tpu.core_type<tc>, window_params = [{transform_indices = @transform_0, window_bounds = array<i64: 2, 128>}, {transform_indices = @transform_1, window_bounds = array<i64: 4, 128>}, {transform_indices = @transform_2, window_bounds = array<i64: 2, 4, 128>}, {transform_indices = @transform_3, window_bounds = array<i64: 2, 4, 128>}, {transform_indices = @transform_4, window_bounds = array<i64: 4, 128>}, {transform_indices = @transform_5, window_bounds = array<i64: 3, 128>}, {transform_indices = @transform_6, window_bounds = array<i64: 1, 128>}, {transform_indices = @transform_7, window_bounds = array<i64: 1, 3, 128>}]} {
    %c0_i32 = arith.constant 0 : i32
    %0 = arith.cmpi eq, %arg1, %c0_i32 : i32
    %1 = arith.extui %0 : i1 to i32
    %c0_i32_0 = arith.constant 0 : i32
    %2 = arith.cmpi ne, %1, %c0_i32_0 : i32
    scf.if %2 {
      %cst_46 = arith.constant 0.000000e+00 : f32
      %100 = vector.broadcast %cst_46 : f32 to vector<3x128xf32>
      %c0_47 = arith.constant 0 : index
      %c0_48 = arith.constant 0 : index
      %101 = vector.load %arg10[%c0_47, %c0_48] : memref<3x128xf32, #tpu.memory_space<vmem>>, vector<3x128xf32>
      tpu.vector_store %arg10[%c0_47, %c0_48], %100 {strides = array<i32>} : memref<3x128xf32, #tpu.memory_space<vmem>>, vector<3x128xf32>,
    } else {
    }
    %c0 = arith.constant 0 : index
    %c0_1 = arith.constant 0 : index
    %3 = vector.load %arg2[%c0, %c0_1] : memref<2x128xf32, #tpu.memory_space<vmem>>, vector<2x128xf32>
    %4 = vector.extract_strided_slice %3 {offsets = [0, 0], sizes = [1, 128], strides = [1, 1]} : vector<2x128xf32> to vector<1x128xf32>
    %5 = vector.extract_strided_slice %3 {offsets = [1, 0], sizes = [1, 128], strides = [1, 1]} : vector<2x128xf32> to vector<1x128xf32>
    %c0_2 = arith.constant 0 : index
    %c0_3 = arith.constant 0 : index
    %6 = vector.load %arg3[%c0_2, %c0_3] : memref<4x128xf32, #tpu.memory_space<vmem>>, vector<4x128xf32>
    %c0_4 = arith.constant 0 : index
    %c0_5 = arith.constant 0 : index
    %c0_6 = arith.constant 0 : index
    %7 = vector.load %arg4[%c0_4, %c0_5, %c0_6] : memref<2x4x128xf32, #tpu.memory_space<vmem>>, vector<1x4x128xf32>
    %8 = vector.shape_cast %7 : vector<1x4x128xf32> to vector<4x128xf32>
    %c1 = arith.constant 1 : index
    %c0_7 = arith.constant 0 : index
    %c0_8 = arith.constant 0 : index
    %9 = vector.load %arg4[%c1, %c0_7, %c0_8] : memref<2x4x128xf32, #tpu.memory_space<vmem>>, vector<1x4x128xf32>
    %10 = vector.shape_cast %9 : vector<1x4x128xf32> to vector<4x128xf32>
    %c0_9 = arith.constant 0 : index
    %c0_10 = arith.constant 0 : index
    %c0_11 = arith.constant 0 : index
    %11 = vector.load %arg5[%c0_9, %c0_10, %c0_11] : memref<2x4x128xf32, #tpu.memory_space<vmem>>, vector<1x4x128xf32>
    %12 = vector.shape_cast %11 : vector<1x4x128xf32> to vector<4x128xf32>
    %c1_12 = arith.constant 1 : index
    %c0_13 = arith.constant 0 : index
    %c0_14 = arith.constant 0 : index
    %13 = vector.load %arg5[%c1_12, %c0_13, %c0_14] : memref<2x4x128xf32, #tpu.memory_space<vmem>>, vector<1x4x128xf32>
    %14 = vector.shape_cast %13 : vector<1x4x128xf32> to vector<4x128xf32>
    %c0_15 = arith.constant 0 : index
    %c0_16 = arith.constant 0 : index
    %15 = vector.load %arg6[%c0_15, %c0_16] : memref<4x128xf32, #tpu.memory_space<vmem>>, vector<4x128xf32>
    %16 = arith.mulf %12, %12 : vector<4x128xf32>
    %cst = arith.constant 9.99999997E-7 : f32
    %17 = vector.broadcast %cst : f32 to vector<4x128xf32>
    %18 = arith.addf %16, %17 : vector<4x128xf32>
    %19 = arith.mulf %14, %14 : vector<4x128xf32>
    %cst_17 = arith.constant 9.99999997E-7 : f32
    %20 = vector.broadcast %cst_17 : f32 to vector<4x128xf32>
    %21 = arith.addf %19, %20 : vector<4x128xf32>
    %22 = arith.mulf %15, %12 : vector<4x128xf32>
    %23 = arith.mulf %22, %14 : vector<4x128xf32>
    %24 = vector.broadcast %4 : vector<1x128xf32> to vector<4x128xf32>
    %25 = arith.subf %24, %8 : vector<4x128xf32>
    %26 = vector.broadcast %5 : vector<1x128xf32> to vector<4x128xf32>
    %27 = arith.subf %26, %10 : vector<4x128xf32>
    %28 = arith.mulf %18, %21 : vector<4x128xf32>
    %29 = arith.mulf %23, %23 : vector<4x128xf32>
    %30 = arith.subf %28, %29 : vector<4x128xf32>
    %31 = arith.mulf %25, %25 : vector<4x128xf32>
    %32 = arith.mulf %31, %21 : vector<4x128xf32>
    %cst_18 = arith.constant 2.000000e+00 : f32
    %33 = vector.broadcast %cst_18 : f32 to vector<4x128xf32>
    %34 = arith.mulf %33, %23 : vector<4x128xf32>
    %35 = arith.mulf %25, %27 : vector<4x128xf32>
    %36 = arith.mulf %34, %35 : vector<4x128xf32>
    %37 = arith.subf %32, %36 : vector<4x128xf32>
    %38 = arith.mulf %27, %27 : vector<4x128xf32>
    %39 = arith.mulf %38, %18 : vector<4x128xf32>
    %40 = arith.addf %37, %39 : vector<4x128xf32>
    %41 = arith.divf %40, %30 : vector<4x128xf32>
    %42 = math.log %30 : vector<4x128xf32>
    %43 = arith.addf %41, %42 : vector<4x128xf32>
    %cst_19 = arith.constant 5.000000e-01 : f32
    %44 = vector.broadcast %cst_19 : f32 to vector<4x128xf32>
    %45 = arith.mulf %44, %43 : vector<4x128xf32>
    %46 = arith.subf %6, %45 : vector<4x128xf32>
    %cst_20 = arith.constant 1.83787704 : f32
    %47 = vector.broadcast %cst_20 : f32 to vector<4x128xf32>
    %48 = arith.subf %46, %47 : vector<4x128xf32>
    %cst_21 = arith.constant dense<0xFF800000> : vector<128xf32>
    %49 = vector.multi_reduction <maximumf>, %48, %cst_21 [0] : vector<4x128xf32> to vector<128xf32>
    %50 = vector.shape_cast %49 : vector<128xf32> to vector<1x128xf32>
    %51 = vector.broadcast %50 : vector<1x128xf32> to vector<4x128xf32>
    %52 = arith.subf %48, %51 : vector<4x128xf32>
    %53 = math.exp %52 : vector<4x128xf32>
    %cst_22 = arith.constant dense<0.000000e+00> : vector<128xf32>
    %54 = vector.multi_reduction <add>, %53, %cst_22 [0] : vector<4x128xf32> to vector<128xf32>
    %55 = vector.shape_cast %54 : vector<128xf32> to vector<1x128xf32>
    %56 = math.log %55 : vector<1x128xf32>
    %57 = arith.addf %50, %56 : vector<1x128xf32>
    %cst_23 = arith.constant 0.000000e+00 : f32
    %58 = vector.broadcast %cst_23 : f32 to vector<1x128xf32>
    %59 = arith.subf %58, %57 : vector<1x128xf32>
    %c0_24 = arith.constant 0 : index
    %c0_25 = arith.constant 0 : index
    %60 = vector.load %arg8[%c0_24, %c0_25] : memref<1x128xi32, #tpu.memory_space<vmem>>, vector<1x128xi32>
    %c0_26 = arith.constant 0 : index
    %c0_27 = arith.constant 0 : index
    %61 = vector.load %arg7[%c0_26, %c0_27] : memref<3x128xf32, #tpu.memory_space<vmem>>, vector<3x128xf32>
    %62 = tpu.iota {dimensions = array<i32: 0>} : vector<3x128xi32>
    %63 = vector.broadcast %60 : vector<1x128xi32> to vector<3x128xi32>
    %64 = arith.cmpi eq, %62, %63 : vector<3x128xi32>
    %cst_28 = arith.constant 0.000000e+00 : f32
    %65 = vector.broadcast %cst_28 : f32 to vector<3x128xf32>
    %66 = arith.select %64, %61, %65 : vector<3x128xi1>, vector<3x128xf32>
    %cst_29 = arith.constant dense<0.000000e+00> : vector<128xf32>
    %67 = vector.multi_reduction <add>, %66, %cst_29 [0] : vector<3x128xf32> to vector<128xf32>
    %68 = vector.shape_cast %67 : vector<128xf32> to vector<1x128xf32>
    %cst_30 = arith.constant 0.000000e+00 : f32
    %69 = vector.broadcast %cst_30 : f32 to vector<1x128xf32>
    %70 = arith.subf %69, %68 : vector<1x128xf32>
    %c1_i32 = arith.constant 1 : i32
    %71 = arith.muli %arg0, %c1_i32 : i32
    %72 = arith.addi %71, %arg1 : i32
    %c128_i32 = arith.constant 128 : i32
    %73 = arith.muli %72, %c128_i32 : i32
    %74 = tpu.iota {dimensions = array<i32: 1>} : vector<1x128xi32>
    %75 = vector.broadcast %73 : i32 to vector<1x128xi32>
    %76 = arith.addi %75, %74 : vector<1x128xi32>
    %c16_i32 = arith.constant 16 : i32
    %77 = vector.broadcast %c16_i32 : i32 to vector<1x128xi32>
    %78 = arith.cmpi slt, %76, %77 : vector<1x128xi32>
    %c2_i32 = arith.constant 2 : i32
    %79 = vector.broadcast %c2_i32 : i32 to vector<1x128xi32>
    %80 = arith.cmpi ne, %60, %79 : vector<1x128xi32>
    %81 = arith.andi %78, %80 : vector<1x128xi1>
    %c0_31 = arith.constant 0 : index
    %c0_32 = arith.constant 0 : index
    %82 = vector.load %arg10[%c0_31, %c0_32] : memref<3x128xf32, #tpu.memory_space<vmem>>, vector<1x128xf32>
    %cst_33 = arith.constant 0.000000e+00 : f32
    %83 = vector.broadcast %cst_33 : f32 to vector<1x128xf32>
    %84 = arith.select %81, %59, %83 : vector<1x128xi1>, vector<1x128xf32>
    %85 = arith.addf %82, %84 : vector<1x128xf32>
    %c0_34 = arith.constant 0 : index
    %c0_35 = arith.constant 0 : index
    %86 = vector.load %arg10[%c0_34, %c0_35] : memref<3x128xf32, #tpu.memory_space<vmem>>, vector<1x128xf32>
    tpu.vector_store %arg10[%c0_34, %c0_35], %85 {strides = array<i32>} : memref<3x128xf32, #tpu.memory_space<vmem>>, vector<1x128xf32>,
    %c1_36 = arith.constant 1 : index
    %c0_37 = arith.constant 0 : index
    %87 = vector.load %arg10[%c1_36, %c0_37] : memref<3x128xf32, #tpu.memory_space<vmem>>, vector<1x128xf32>
    %cst_38 = arith.constant 0.000000e+00 : f32
    %88 = vector.broadcast %cst_38 : f32 to vector<1x128xf32>
    %89 = arith.select %78, %70, %88 : vector<1x128xi1>, vector<1x128xf32>
    %90 = arith.addf %87, %89 : vector<1x128xf32>
    %c1_39 = arith.constant 1 : index
    %c0_40 = arith.constant 0 : index
    %91 = vector.load %arg10[%c1_39, %c0_40] : memref<3x128xf32, #tpu.memory_space<vmem>>, vector<1x128xf32>
    tpu.vector_store %arg10[%c1_39, %c0_40], %90 {strides = array<i32>} : memref<3x128xf32, #tpu.memory_space<vmem>>, vector<1x128xf32>,
    %c2 = arith.constant 2 : index
    %c0_41 = arith.constant 0 : index
    %92 = vector.load %arg10[%c2, %c0_41] : memref<3x128xf32, #tpu.memory_space<vmem>>, vector<1x128xf32>
    %93 = arith.extui %81 : vector<1x128xi1> to vector<1x128xi32>
    %94 = arith.sitofp %93 : vector<1x128xi32> to vector<1x128xf32>
    %95 = arith.addf %92, %94 : vector<1x128xf32>
    %c2_42 = arith.constant 2 : index
    %c0_43 = arith.constant 0 : index
    %96 = vector.load %arg10[%c2_42, %c0_43] : memref<3x128xf32, #tpu.memory_space<vmem>>, vector<1x128xf32>
    tpu.vector_store %arg10[%c2_42, %c0_43], %95 {strides = array<i32>} : memref<3x128xf32, #tpu.memory_space<vmem>>, vector<1x128xf32>,
    %c0_i32_44 = arith.constant 0 : i32
    %97 = arith.cmpi eq, %arg1, %c0_i32_44 : i32
    %98 = arith.extui %97 : i1 to i32
    %c0_i32_45 = arith.constant 0 : i32
    %99 = arith.cmpi ne, %98, %c0_i32_45 : i32
    scf.if %99 {
      %c0_46 = arith.constant 0 : index
      %c0_47 = arith.constant 0 : index
      %100 = vector.load %arg10[%c0_46, %c0_47] : memref<3x128xf32, #tpu.memory_space<vmem>>, vector<3x128xf32>
      %cst_48 = arith.constant dense<0.000000e+00> : vector<3xf32>
      %101 = vector.multi_reduction <add>, %100, %cst_48 [1] : vector<3x128xf32> to vector<3xf32>
      %102 = vector.shape_cast %101 : vector<3xf32> to vector<3x1xf32>
      %103 = vector.shape_cast %102 : vector<3x1xf32> to vector<3x1xf32>
      %104 = vector.broadcast %103 : vector<3x1xf32> to vector<3x128xf32>
      %105 = vector.shape_cast %104 : vector<3x128xf32> to vector<1x3x128xf32>
      %c0_49 = arith.constant 0 : index
      %c0_50 = arith.constant 0 : index
      %c0_51 = arith.constant 0 : index
      %106 = vector.load %arg9[%c0_49, %c0_50, %c0_51] : memref<1x3x128xf32, #tpu.memory_space<vmem>>, vector<1x3x128xf32>
      tpu.vector_store %arg9[%c0_49, %c0_50, %c0_51], %105 {strides = array<i32>} : memref<1x3x128xf32, #tpu.memory_space<vmem>>, vector<1x3x128xf32>,
    } else {
    }
    return
  }
  func.func @transform_0(%arg0: i32, %arg1: i32) -> (i32, i32) {
    %c1_i32 = arith.constant 1 : i32
    %0 = arith.muli %arg0, %c1_i32 : i32
    %1 = arith.addi %0, %arg1 : i32
    %c0_i32 = arith.constant 0 : i32
    %c0_i32_0 = arith.constant 0 : i32
    return %c0_i32, %1 : i32, i32
  }
  func.func @transform_1(%arg0: i32, %arg1: i32) -> (i32, i32) {
    %c1_i32 = arith.constant 1 : i32
    %0 = arith.muli %arg0, %c1_i32 : i32
    %1 = arith.addi %0, %arg1 : i32
    %c0_i32 = arith.constant 0 : i32
    %c0_i32_0 = arith.constant 0 : i32
    return %c0_i32, %1 : i32, i32
  }
  func.func @transform_2(%arg0: i32, %arg1: i32) -> (i32, i32, i32) {
    %c1_i32 = arith.constant 1 : i32
    %0 = arith.muli %arg0, %c1_i32 : i32
    %1 = arith.addi %0, %arg1 : i32
    %c0_i32 = arith.constant 0 : i32
    %c0_i32_0 = arith.constant 0 : i32
    %c0_i32_1 = arith.constant 0 : i32
    return %c0_i32, %c0_i32_0, %1 : i32, i32, i32
  }
  func.func @transform_3(%arg0: i32, %arg1: i32) -> (i32, i32, i32) {
    %c1_i32 = arith.constant 1 : i32
    %0 = arith.muli %arg0, %c1_i32 : i32
    %1 = arith.addi %0, %arg1 : i32
    %c0_i32 = arith.constant 0 : i32
    %c0_i32_0 = arith.constant 0 : i32
    %c0_i32_1 = arith.constant 0 : i32
    return %c0_i32, %c0_i32_0, %1 : i32, i32, i32
  }
  func.func @transform_4(%arg0: i32, %arg1: i32) -> (i32, i32) {
    %c1_i32 = arith.constant 1 : i32
    %0 = arith.muli %arg0, %c1_i32 : i32
    %1 = arith.addi %0, %arg1 : i32
    %c0_i32 = arith.constant 0 : i32
    %c0_i32_0 = arith.constant 0 : i32
    return %c0_i32, %1 : i32, i32
  }
  func.func @transform_5(%arg0: i32, %arg1: i32) -> (i32, i32) {
    %c1_i32 = arith.constant 1 : i32
    %0 = arith.muli %arg0, %c1_i32 : i32
    %1 = arith.addi %0, %arg1 : i32
    %c0_i32 = arith.constant 0 : i32
    %c0_i32_0 = arith.constant 0 : i32
    return %c0_i32, %1 : i32, i32
  }
  func.func @transform_6(%arg0: i32, %arg1: i32) -> (i32, i32) {
    %c1_i32 = arith.constant 1 : i32
    %0 = arith.muli %arg0, %c1_i32 : i32
    %1 = arith.addi %0, %arg1 : i32
    %c0_i32 = arith.constant 0 : i32
    %c0_i32_0 = arith.constant 0 : i32
    return %c0_i32, %1 : i32, i32
  }
  func.func @transform_7(%arg0: i32, %arg1: i32) -> (i32, i32, i32) {
    %c0_i32 = arith.constant 0 : i32
    %c0_i32_0 = arith.constant 0 : i32
    %c0_i32_1 = arith.constant 0 : i32
    return %arg0, %c0_i32, %c0_i32_0 : i32, i32, i32
  }
}

</mosaic_0001>

<bundles_post_ra>
// kernel: tpu_custom_call.1
= control target key start
LH: loop header
LB: loop body
LE: loop exit
PB: predicated region body
PF: predicated region fallthrough
CT: control target
= control target key end

     0   :  { %s1424_s0 = inlined_call_operand.hbm [shape: f32[2,256], index: 0, kind: input, shape index: {}]   ;;  %s1425_s1 = inlined_call_operand.hbm [shape: f32[4,256], index: 1, kind: input, shape index: {}]   ;;  %s1426_s2 = inlined_call_operand.hbm [shape: f32[2,4,256], index: 2, kind: input, shape index: {}]   ;;  %s1427_s3 = inlined_call_operand.hbm [shape: f32[2,4,256], index: 3, kind: input, shape index: {}]   ;;  %s1428_s4 = inlined_call_operand.vmem [shape: f32[4,256], index: 4, kind: input, shape index: {}]   ;;  %s1429_s5 = inlined_call_operand.vmem [shape: f32[3,256], index: 5, kind: input, shape index: {}]   ;;  %s1430_s6 = inlined_call_operand.vmem [shape: s32[1,256], index: 6, kind: input, shape index: {}]   ;;  %s1431_s7 = inlined_call_operand.vmem [shape: f32[2,3,128], index: 7, kind: output, shape index: {}]  }
   0x1   :  { %1437 = sst [smem:[#allocation17_spill]] %s1424_s0 }
   0x2   :  { %1438 = sst [smem:[#allocation18_spill]] %s1425_s1 }
   0x3   :  { %12 = vsyncpa [#allocation4], 0 }
   0x4   :  { %14 = vsyncpa [#allocation4 + $0x1], 0 }
   0x5   :  { %15 = vsyncpa [#allocation6], 0 }
   0x6   :  { %17 = vsyncpa [#allocation6 + $0x1], 0 }
   0x7   :  { %18 = vsyncpa [#allocation9], 0 }
   0x8   :  { %20 = vsyncpa [#allocation9 + $0x1], 0  ;;  %s1137_s24 = smov 0   ;;  %s1139_s25 = smov 0  }
   0x9   :  { %s1141_s26 = smov 0   ;;  %s1143_s27 = smov 0  }
   0xa   :  { %s1145_s28 = smov 0   ;;  %s1147_s29 = smov 0  }
   0xb LB: > { %1439 = sst [smem:[#allocation13_spill]] %s1075_s26  ;;  %s1432_s30 = sadd.s32 4294967295, %s1087_s29   ;;  %s1087_s29 = sphi %s1147_s29, %s26_s29   ;;  %s1083_s28 = sphi %s1145_s28, %s1459_s28   ;;  %s1079_s27 = sphi %s1143_s27, %s1458_s27   ;;  %s1075_s26 = sphi %s1141_s26, %s1457_s26   ;;  %s1071_s25 = sphi %s1139_s25, %s1461_s25   ;;  %s1067_s24 = sphi %s1137_s24, %s1460_s24  }
   0xc   : > { %1440 = sst [smem:[#allocation14_spill]] %s1083_s28  ;;  %s38_s8 = sadd.s32 1, %s1083_s28 }
   0xd   : > { %p40_p0 = scmp.ge.s32.totalorder %s38_s8, 2  ;;  %s47_s9 = sadd.s32 1, %s1075_s26 }
   0xe   : > { %p54_p1 = scmp.ne.s32.totalorder %s1075_s26, %s1071_s25  ;;  %p55_p2 = scmp.eq.s32.totalorder %s1087_s29, 0 }
   0xf   : > { %s1463_s8 = smov (%p40_p0, %s38_s8), 0  ;;  %p60_p4 = scmp.ne.s32.totalorder %s1071_s25, %s1067_s24 }
  0x10   : > { %1441 = sst [smem:[#allocation15_spill]] %s1463_s8  ;;  %p56_p3 = por %p55_p2, %p54_p1 }
  0x11   : > { %s44_s10 = ssub.s32 %s1083_s28, %s1463_s8  ;;  %p61_p5 = scmp.eq.s32.totalorder %s1432_s30, 0 }
  0x12   : > { %p45_p6 = scmp.eq.s32.totalorder %s44_s10, 0  ;;  %p848_p8 = scmp.lt.s32.totalorder %s1087_s29, 2 }
  0x13   : > { %p1178_p7 = por %p61_p5, %p60_p4  ;;  %s1187_s13 = sand.u32 1, %s1075_s26  }
  0x14   : > { %s1184_s12 = scalar_select %p45_p6, %s1075_s26, %s47_s9  }
  0x15   : > { %s1442_s11 = scalar_select %p1178_p7, 1, 0 }
  0x16   : > { %1443 = sst [smem:[#allocation16_spill]] %s1184_s12  ;;  %p1189_p9 = pnand %p848_p8, %p56_p3 }
  0x17   : > { %s297_s15 = sand.u32 1, %s1087_s29   ;;  %s806_s16 = sshll.u32 %s1187_s13, 2 }
  0x18   : > { %s1196_s17 = sshll.u32 %s1083_s28, 6  ;;  %s1445_s1 = sld [smem:[#allocation18_spill]] }
  0x19   : > { %s301_s21 = scalar_lea.vmem [#allocation5], %s806_s16  ;;  %s1207_s24 = scalar_lea.sflag [#allocation6], %s297_s15 }
  0x1a   : > { %s309_s22 = sshll.u32 %s301_s21, 4  ;;  %p1213_p11 = pneg %p1189_p9  ;;  %s1204_s22 = int_to_ptr.vmem [resolvable:$true] %s309_s22 }
  0x1e   : > { %s1202_s20 = scalar_lea.hbm %s1445_s1, %s1196_s17  ;;  %s914_s16 = scalar_lea.hbm %s1445_s1, 128 }
  0x1f   : > { %s909_s9 = scalar_lea.hbm %s1202_s20, 64  ;;  %p915_p0 = scmp.lt.u32.totalorder %s1202_s20, %s1445_s1 }
  0x20   : > { %p910_p10 = scmp.ne.s32.totalorder %s1202_s20, %s909_s9  ;;  %p916_p1 = scmp.lt.u32.totalorder %s914_s16, %s909_s9 }
  0x21   : > { %p918_p3 = scmp.lt.u32.totalorder %s909_s9, %s1202_s20 }
  0x22   : > { %p912_p12 = pnand %p1213_p11, %p910_p10  ;;  %p917_p2 = por %p916_p1, %p915_p0 }
  0x24   : > { %p913_p13 = pneg %p912_p12  ;;  %p919_p4 = por %p918_p3, %p917_p2 }
  0x26   : > { %p920_p5 = pnand %p919_p4, %p913_p13 }
  0x28   : > { %923 = shalt.err (!%p920_p5)
}
  0x29   : > { %s924_s15 = scalar_lea.vmem %s1204_s22, 64  ;;  %s1089_s18 = smov [#allocation5]  }
  0x2a   : > { %p925_p6 = scmp.ne.s32.totalorder %s1204_s22, %s924_s15  ;;  %s929_s19 = sshll.u32 %s1089_s18, 4  ;;  %s930_s19 = int_to_ptr.vmem [resolvable:$false] %s929_s19 }
  0x2b   : > { %s931_s30 = scalar_lea.vmem %s930_s19, 128  ;;  %p932_p12 = scmp.lt.s32.totalorder %s1204_s22, %s930_s19 }
  0x2c   : > { %p927_p8 = pnand %p925_p6, %p1213_p11  ;;  %p933_p7 = scmp.lt.s32.totalorder %s931_s30, %s924_s15 }
  0x2e   : > { %p928_p10 = pneg %p927_p8  ;;  %p934_p0 = por %p933_p7, %p932_p12 }
  0x30   : > { %p935_p1 = pnand %p934_p0, %p928_p10 }
  0x32   : > { %938 = shalt.err (!%p935_p1)
}
  0x33   : > { %841 = dma.hbm_to_vmem [thread:$0]  (!%p1189_p9), %s1202_s20, 64, %s1204_s22, %s1207_s24  }
  0x34   : > { %s1241_s21 = scalar_lea.hbm %s1426_s2, %s1196_s17  ;;  %s1247_s19 = scalar_lea.hbm %s1427_s3, %s1196_s17 }
  0x35   : > { %p812_p7 = scmp.ge.s32.totalorder %s1087_s29, 1  ;;  %p382_p13 = scmp.lt.s32.totalorder %s1087_s29, 3 }
  0x36   : > { %s804_s23 = sshll.u32 %s1187_s13, 1  ;;  %s805_s1 = sshll.u32 %s1083_s28, 5 }
  0x37   : > { %p1251_p2 = pnand %p812_p7, %p382_p13  ;;  %s1448_s0 = sld [smem:[#allocation17_spill]] }
  0x38   : > { %s282_s16 = scalar_lea.vmem [#allocation3], %s804_s23  ;;  %s1449_s15 = sshll.u32 %s1187_s13, 3 }
  0x39   : > { %s1447_s30 = scalar_select %p1251_p2, 1, 0 }
  0x3a   : > { %s290_s17 = sshll.u32 %s282_s16, 4  ;;  %s1266_s18 = scalar_lea.vmem [#allocation7], %s1449_s15  ;;  %s1262_s17 = int_to_ptr.vmem [resolvable:$true] %s290_s17 }
  0x3b   : > { %s327_s8 = sshll.u32 %s1266_s18, 4  ;;  %s279_s12 = scalar_lea.sflag [#allocation4], %s1187_s13  ;;  %s1293_s8 = int_to_ptr.vmem [resolvable:$true] %s327_s8 }
  0x3d   : > { %s1260_s9 = scalar_lea.hbm %s1448_s0, %s805_s1  ;;  %s944_s22 = scalar_lea.hbm %s1448_s0, 64 }
  0x3e   : > { %s939_s28 = scalar_lea.hbm %s1260_s9, 32  ;;  %p945_p6 = scmp.lt.u32.totalorder %s1260_s9, %s1448_s0 }
  0x3f   : > { %p940_p3 = scmp.ne.s32.totalorder %s1260_s9, %s939_s28  ;;  %p946_p8 = scmp.lt.u32.totalorder %s944_s22, %s939_s28 }
  0x40   : > { %p948_p12 = scmp.lt.u32.totalorder %s939_s28, %s1260_s9 }
  0x41   : > { %p942_p4 = pnand %p940_p3, %p1213_p11  ;;  %p947_p10 = por %p946_p8, %p945_p6 }
  0x43   : > { %p943_p5 = pneg %p942_p4  ;;  %p949_p0 = por %p948_p12, %p947_p10 }
  0x45   : > { %p950_p1 = pnand %p949_p0, %p943_p5 }
  0x47   : > { %953 = shalt.err (!%p950_p1)
}
  0x48   : > { %s954_s16 = scalar_lea.vmem %s1262_s17, 32  ;;  %s1090_s15 = smov [#allocation3]  }
  0x49   : > { %p955_p7 = scmp.ne.s32.totalorder %s1262_s17, %s954_s16  ;;  %s959_s1 = sshll.u32 %s1090_s15, 4  ;;  %s960_s1 = int_to_ptr.vmem [resolvable:$false] %s959_s1 }
  0x4a   : > { %s961_s26 = scalar_lea.vmem %s960_s1, 64  ;;  %p962_p4 = scmp.lt.s32.totalorder %s1262_s17, %s960_s1 }
  0x4b   : > { %p957_p13 = pnand %p955_p7, %p1213_p11  ;;  %p963_p2 = scmp.lt.s32.totalorder %s961_s26, %s954_s16 }
  0x4d   : > { %p958_p3 = pneg %p957_p13  ;;  %p964_p6 = por %p963_p2, %p962_p4 }
  0x4f   : > { %p965_p8 = pnand %p964_p6, %p958_p3 }
  0x51   : > { %968 = shalt.err (!%p965_p8)
}
  0x52   : > { %838 = dma.hbm_to_vmem [thread:$0]  (!%p1189_p9), %s1260_s9, 32, %s1262_s17, %s279_s12  }
  0x53   : > { %s969_s28 = scalar_lea.hbm %s1241_s21, 128  ;;  %s974_s23 = scalar_lea.hbm %s1426_s2, 256 }
  0x54   : > { %p970_p5 = scmp.ne.s32.totalorder %s1241_s21, %s969_s28  ;;  %p975_p12 = scmp.lt.u32.totalorder %s1241_s21, %s1426_s2 }
  0x55   : > { %p976_p0 = scmp.lt.u32.totalorder %s974_s23, %s969_s28  ;;  %p978_p7 = scmp.lt.u32.totalorder %s969_s28, %s1241_s21 }
  0x56   : > { %p972_p2 = pnand %p970_p5, %p1213_p11 }
  0x57   : > { %p977_p1 = por %p976_p0, %p975_p12 }
  0x58   : > { %p973_p10 = pneg %p972_p2 }
  0x59   : > { %p979_p13 = por %p978_p7, %p977_p1 }
  0x5b   : > { %p980_p3 = pnand %p979_p13, %p973_p10 }
  0x5d   : > { %983 = shalt.err (!%p980_p3)
}
  0x5e   : > { %s984_s12 = scalar_lea.vmem %s1293_s8, 128  ;;  %s1091_s9 = smov [#allocation7]  }
  0x5f   : > { %p985_p4 = scmp.ne.s32.totalorder %s1293_s8, %s984_s12  ;;  %s989_s17 = sshll.u32 %s1091_s9, 4  ;;  %s990_s17 = int_to_ptr.vmem [resolvable:$false] %s989_s17 }
  0x60   : > { %s991_s18 = scalar_lea.vmem %s990_s17, 256  ;;  %p992_p5 = scmp.lt.s32.totalorder %s1293_s8, %s990_s17 }
  0x61   : > { %p987_p6 = pnand %p985_p4, %p1213_p11  ;;  %p993_p2 = scmp.lt.s32.totalorder %s991_s18, %s984_s12 }
  0x63   : > { %p988_p8 = pneg %p987_p6  ;;  %p994_p12 = por %p993_p2, %p992_p5 }
  0x65   : > { %p995_p0 = pnand %p994_p12, %p988_p8 }
  0x67   : > { %998 = shalt.err (!%p995_p0)
}
  0x68   : > { %s1092_s1 = smov 128   ;;  %s1093_s26 = smov 64  }
  0x69   : > { %s1094_s28 = smov 4   ;;  %s1450_s20 = sshll.u32 %s1187_s13, 3 }
  0x6a   : > { %844 = dma.hbm_to_vmem [thread:$0]  (!%p1189_p9), %s1241_s21, 128, %s1293_s8, %s1207_s24, %s1092_s1, %s1093_s26, %s1094_s28  }
  0x6b   : > { %s341_s22 = scalar_lea.vmem [#allocation8], %s1450_s20  ;;  %s338_s16 = scalar_lea.sflag [#allocation9], %s1187_s13 }
  0x6c   : > { %s348_s23 = sshll.u32 %s341_s22, 4  ;;  %s999_s15 = scalar_lea.hbm %s1247_s19, 128  ;;  %s1322_s23 = int_to_ptr.vmem [resolvable:$true] %s348_s23 }
  0x6d   : > { %p1000_p10 = scmp.ne.s32.totalorder %s1247_s19, %s999_s15  ;;  %s1004_s17 = scalar_lea.hbm %s1427_s3, 256 }
  0x6e   : > { %p1005_p13 = scmp.lt.u32.totalorder %s1247_s19, %s1427_s3  ;;  %p1006_p3 = scmp.lt.u32.totalorder %s1004_s17, %s999_s15 }
  0x6f   : > { %p1002_p1 = pnand %p1000_p10, %p1213_p11  ;;  %p1008_p6 = scmp.lt.u32.totalorder %s999_s15, %s1247_s19 }
  0x70   : > { %p1007_p4 = por %p1006_p3, %p1005_p13 }
  0x71   : > { %p1003_p7 = pneg %p1002_p1 }
  0x72   : > { %p1009_p8 = por %p1008_p6, %p1007_p4 }
  0x74   : > { %p1010_p5 = pnand %p1009_p8, %p1003_p7 }
  0x76   : > { %1013 = shalt.err (!%p1010_p5)
}
  0x77   : > { %s1014_s8 = scalar_lea.vmem %s1322_s23, 128  ;;  %s1095_s24 = smov [#allocation8]  }
  0x78   : > { %p1015_p2 = scmp.ne.s32.totalorder %s1322_s23, %s1014_s8  ;;  %s1019_s21 = sshll.u32 %s1095_s24, 4  ;;  %s1020_s21 = int_to_ptr.vmem [resolvable:$false] %s1019_s21 }
  0x79   : > { %s1021_s0 = scalar_lea.vmem %s1020_s21, 256  ;;  %p1022_p10 = scmp.lt.s32.totalorder %s1322_s23, %s1020_s21 }
  0x7a   : > { %p1017_p12 = pnand %p1015_p2, %p1213_p11  ;;  %p1023_p1 = scmp.lt.s32.totalorder %s1021_s0, %s1014_s8 }
  0x7c   : > { %p1018_p0 = pneg %p1017_p12  ;;  %p1024_p13 = por %p1023_p1, %p1022_p10 }
  0x7e   : > { %p1025_p3 = pnand %p1024_p13, %p1018_p0 }
  0x80   : > { %1028 = shalt.err (!%p1025_p3)
}
  0x81   : > { %847 = dma.hbm_to_vmem [thread:$0]  (!%p1189_p9), %s1247_s19, 128, %s1322_s23, %s338_s16, %s1092_s1, %s1093_s26, %s1094_s28  }
  0x82   : > { %p1451_p11 = scmp.ne.s32.totalorder %s1447_s30, 0 }
  0x83   : > { %s388_s10 = sand.u32 (!%p1451_p11), 1, %s1071_s25   ;;  %p1452_p7 = scmp.ne.s32.totalorder (!%p1451_p11), %s1442_s11, 0 }
  0x84   : > { %386 = sbr.rel (%p1451_p11) target bundleno = 396 (0x18c), region = 48  ;;  %s813_s20 = sshll.u32 (!%p1451_p11), %s388_s10, 1 }
  0x85   : > { %s389_s22 = scalar_lea.sflag (!%p1451_p11), [#allocation4], %s388_s10  ;;  %s1354_s15 = scalar_lea.vmem (!%p1451_p11), [#allocation3], %s813_s20 }
  0x8b   : > { %1054 = dma.done.wait (%p1452_p7), %s389_s22, 32  }
  0x8c   : > { %1056 = vsyncadd (%p1452_p7), %s389_s22, 4294967264  ;;  %s1453_s13 = sadd.s32 4294967295, %s1087_s29   ;;  %s814_s19 = sshll.u32 %s388_s10, 2 }
  0x8d   : > { %s397_s14 = sand.u32 1, %s1453_s13   ;;  %s1362_s30 = scalar_lea.vmem [#allocation5], %s814_s19 }
  0x8e   : > { %s398_s1 = scalar_lea.sflag [#allocation6], %s397_s14 }
  0x8f   : > { %1058 = dma.done.wait (%p1452_p7), %s398_s1, 192  }
  0x90   : > { %1060 = vsyncadd (%p1452_p7), %s398_s1, 4294967104  ;;  %s815_s26 = sshll.u32 %s388_s10, 3  ;;  %s416_s23 = scalar_lea.sflag [#allocation9], %s388_s10 }
  0x91   : > { %s410_s28 = scalar_lea.vmem [#allocation7], %s815_s26  ;;  %s419_s16 = scalar_lea.vmem [#allocation8], %s815_s26 }
  0x92   : > { %1062 = dma.done.wait (%p1452_p7), %s416_s23, 128  }
  0x93   : > { %1064 = vsyncadd (%p1452_p7), %s416_s23, 4294967168  ;;  %p483_p9 = scmp.lt.s32.totalorder %s1079_s27, 1  ;;  %v523_v0 = vlaneseq  ;;  %s823_s12 = sshll.u32 %s1079_s27, 7  ;;  %v1096_v1 = vmov 0.0   ;;  %v508_v8 = vld [vmem:[%s1354_s15] sm:$0x3] }
  0x94   : > { %507 = vst [vmem:[#allocation2] sm:$0x7] %v1096_v1  ;;  %v598_v4 = vstv %s823_s12  ;;  %v510_v9 = vld [vmem:[%s410_s28] sm:$0xf]  ;;  %v820_v10 = vld [vmem:[%s410_s28 + $0x4] sm:$0xf] }
  0x95   : > { %s1465_s27 = smov (!%p483_p9, %s1079_s27), 1  ;;  %v524_v2 = vshrl.u32 %v523_v0, 7  ;;  %v597_v3 = vand.u32 127, %v523_v0  ;;  %v513_v11 = vld [vmem:[%s419_s16] sm:$0xf]  ;;  %vm585_vm2 = vcmask 1042432  }
  0x96   : > { %s1375_s9 = sshll.u32 %s1465_s27, 2  ;;  %s497_s21 = scalar_lea.vmem %s1430_s6, %s1465_s27  ;;  %v821_v12 = vld [vmem:[%s419_s16 + $0x4] sm:$0xf]  ;;  %v517_v16 = vmul.f32 %v513_v11, %v513_v11  ;;  %vm553_vm5 = vcmask 1043456  }
  0x97   : > { %v525_v5 = vsub.s32 0, %v524_v2  ;;  %v530_v6 = vsub.s32 1, %v524_v2  ;;  %v599_v7 = vadd.s32 %v598_v4, %v597_v3  ;;  %s486_s18 = scalar_lea.vmem %s1428_s4, %s1375_s9  ;;  %s492_s20 = scalar_lea.vmem %s1429_s5, %s1375_s9  ;;  %v519_v17 = vmul.f32 %v821_v12, %v821_v12  ;;  %v575_v18 = vld [vmem:[%s497_s21] sm:$0x1]  ;;  %v509_v60 = vld [vmem:[%s1362_s30] sm:$0xf] }
  0x98   : > { %v516_v15 = vld [vmem:[%s486_s18] sm:$0xf]  ;;  %v518_v23 = vadd.f32 1e-06, %v517_v16  ;;  %vm601_vm1 = vcmp.ne.s32.totalorder %v575_v18, 2  ;;  %s502_s15 = scalar_lea.vmem %s1431_s7, %s1375_s9 }
  0x99   : > { %v526_v13 = vrot.slane %v508_v8, %v525_v5  ;;  %v531_v14 = vrot.slane %v508_v8, %v530_v6  ;;  %vm600_vm0 = vcmp.lt.s32.totalorder %v599_v7, 16  ;;  %v521_v19 = vmul.f32 %v516_v15, %v513_v11  ;;  %v576_v27 = vld [vmem:[%s492_s20] sm:$0x7] }
  0x9a   : > { %v582_v22 = vrot.slane %v575_v18, %v525_v5  ;;  %v520_v24 = vadd.f32 1e-06, %v519_v17  ;;  %vm1390_vm3 = vmand %vm600_vm0, %vm601_vm1 }
  0x9b   : > { %v527_v20 = vsub.f32 %v526_v13, %v510_v9  ;;  %v532_v21 = vsub.f32 %v531_v14, %v820_v10  ;;  %v522_v25 = vmul.f32 %v821_v12, %v521_v19  ;;  %v611_v29 = vld [vmem:[#allocation2 + $0x2] sm:$0x1]  ;;  %v824_v32 = vsel %vm1390_vm3, 1.0, %v1096_v1  ;;  %v607_v55 = vld [vmem:[#allocation2 + $0x1] sm:$0x1] }
  0x9c   : > { %v533_v30 = vmul.f32 %v520_v24, %v518_v23  ;;  %vm583_vm4 = vcmp.eq.s32.totalorder %v524_v2, %v582_v22  ;;  %v614_v36 = vadd.f32 %v824_v32, %v611_v29 }
  0x9d   : > { %v536_v26 = vmul.f32 %v527_v20, %v527_v20  ;;  %v539_v31 = vmul.f32 %v532_v21, %v527_v20  ;;  %v534_v33 = vmul.f32 %v522_v25, %v522_v25  ;;  %v538_v34 = vmul.f32 2.0, %v522_v25 }
  0x9e   : > { %v584_v35 = vsel %vm583_vm4, %v576_v27, 0.0  ;;  %v542_v41 = vmul.f32 %v532_v21, %v532_v21  ;;  %615 = vst [vmem:[#allocation2 + $0x2] sm:$0x1] %v614_v36  ;;  %v603_v21 = vld [vmem:[#allocation2] sm:$0x1] }
  0x9f   : > { %v535_v37 = vsub.f32 %v533_v30, %v534_v33  ;;  %v586_v38 = vsel %vm585_vm2, %v584_v35, 0.0  ;;  %v537_v39 = vmul.f32 %v536_v26, %v520_v24  ;;  %v540_v40 = vmul.f32 %v539_v31, %v538_v34 }
  0xa0   : > { %v587_v42 = vrot.slane %v586_v38, 4  ;;  %v543_v45 = vmul.f32 %v542_v41, %v518_v23 }
  0xa1   : > { %901 = vrcp.f32 %v535_v37  ;;  %v541_v44 = vsub.f32 %v537_v39, %v540_v40 }
  0xa2   : > { %903 = vlog2.f32 %v535_v37  ;;  %v588_v43 = vadd.f32 %v587_v42, %v586_v38 }
  0xa3   : > { %v544_v48 = vadd.f32 %v543_v45, %v541_v44 }
  0xa4   : > { %v589_v46 = vrot.slane %v588_v43, 2 }
  0xa6   : > { %v590_v47 = vadd.f32 %v589_v46, %v588_v43 }
  0xa8   : > { %v591_v49 = vrot.slane %v590_v47, 1 }
  0xaa   : > { %v592_v50 = vadd.f32 %v591_v49, %v590_v47 }
  0xab   : > { %v902_v51 = vpop.eup %901 }
  0xac   : > { %v904_v52 = vpop.eup %903  ;;  %v546_v53 = vmul.f32 %v902_v51, %v544_v48  ;;  %v593_v54 = vsub.f32 0.0, %v592_v50 }
  0xad   : > { %v548_v56 = vmul.f32 0.6931472, %v904_v52 }
  0xae   : > { %v608_v57 = vsel %vm600_vm0, %v593_v54, 0.0 }
  0xaf   : > { %v549_v58 = vadd.f32 %v548_v56, %v546_v53  ;;  %v609_v59 = vadd.f32 %v608_v57, %v607_v55 }
  0xb1   : > { %v550_v61 = vmul.f32 0.5, %v549_v58  ;;  %610 = vst [vmem:[#allocation2 + $0x1] sm:$0x1] %v609_v59 }
  0xb3   : > { %v551_v62 = vsub.f32 %v509_v60, %v550_v61 }
  0xb5   : > { %v822_v63 = vadd.f32 -1.837877, %v551_v62 }
  0xb7   : > { %v554_v0 = vsel %vm553_vm5, %v822_v63, -inf }
  0xb8   : > { %v555_v1 = vrot.slane %v554_v0, 4 }
  0xba   : > { %v556_v2 = vmax.f32 %v554_v0, %v555_v1 }
  0xbc   : > { %v557_v3 = vrot.slane %v556_v2, 2 }
  0xbe   : > { %v558_v4 = vmax.f32 %v556_v2, %v557_v3 }
  0xc0   : > { %v559_v5 = vrot.slane %v558_v4, 1 }
  0xc2   : > { %v560_v6 = vmax.f32 %v558_v4, %v559_v5 }
  0xc4   : > { %v561_v8 = vsub.f32 %v822_v63, %v560_v6 }
  0xc6   : > { %v562_v9 = vmul.f32 1.442695, %v561_v8 }
  0xc8   : > { %905 = vpow2.f32 %v562_v9 }
  0xd2   : > { %v906_v7 = vpop.eup %905 }
  0xd3   : > { %v564_v10 = vsel %vm553_vm5, %v906_v7, 0.0 }
  0xd4   : > { %v565_v11 = vrot.slane %v564_v10, 4 }
  0xd6   : > { %v566_v12 = vadd.f32 %v565_v11, %v564_v10 }
  0xd8   : > { %v567_v13 = vrot.slane %v566_v12, 2 }
  0xda   : > { %v568_v14 = vadd.f32 %v567_v13, %v566_v12 }
  0xdc   : > { %v569_v15 = vrot.slane %v568_v14, 1 }
  0xde   : > { %v570_v16 = vadd.f32 %v569_v15, %v568_v14 }
  0xe0   : > { %907 = vlog2.f32 %v570_v16 }
  0xea   : > { %v908_v17 = vpop.eup %907 }
  0xeb   : > { %v572_v18 = vmul.f32 0.6931472, %v908_v17 }
  0xed   : > { %v573_v19 = vadd.f32 %v572_v18, %v560_v6 }
  0xef   : > { %v574_v20 = vsub.f32 0.0, %v573_v19 }
  0xf1   : > { %v604_v22 = vsel %vm1390_vm3, %v574_v20, 0.0 }
  0xf2   : > { %v605_v23 = vadd.f32 %v604_v22, %v603_v21 }
  0xf4   : > { %606 = vst [vmem:[#allocation2] sm:$0x1] %v605_v23 }
  0xfb   : > { %v619_v24 = vld [vmem:[#allocation2] sm:$0x7] }
  0xfc   : > { %v620_v25 = vsel %vm585_vm2, %v619_v24, 0.0 }
  0xfd   : > { %621 = vadd.xlane.f32.xlu0 %v620_v25 }
 0x18a   : > { %v622_v26 = vpop.xlane.xlu0 %621 }
 0x18b   : > { %623 = vst [vmem:[%s502_s15] sm:$0x7] %v622_v26 }
 0x18c PF: > { %s26_s29 = sadd.s32 1, %s1087_s29   ;;  %s1456_s13 = sld [smem:[#allocation13_spill]] }
 0x18d   : > { %p23_p4 = scmp.ge.s32.totalorder %s26_s29, 4   ;;  %s1457_s26 = sld [smem:[#allocation16_spill]] }
 0x18e   : > { %s1458_s27 = sld [smem:[#allocation14_spill]]  ;;  %s1459_s28 = sld [smem:[#allocation15_spill]] }
 0x18f   : > { %s1460_s24 = smov %s1071_s25  ;;  %25 = sbr.rel (!%p23_p4) target bundleno = 11 (0xb), region = 144 }
 0x192   : > { %s1461_s25 = smov %s1456_s13 }
 0x196   :  { %643 = vsyncpa [#allocation4], 1 }
 0x197   :  { %645 = vsyncpa [#allocation4 + $0x1], 1 }
 0x198   :  { %646 = vsyncpa [#allocation6], 1 }
 0x199   :  { %648 = vsyncpa [#allocation6 + $0x1], 1 }
 0x19a   :  { %649 = vsyncpa [#allocation9], 1 }
 0x19b   :  { %651 = vsyncpa [#allocation9 + $0x1], 1 }

</bundles_post_ra>
